<compile_context>
chip_gen: v6e
topology: v6e:2x2x1
jax: 0.10.0
libtpu: 0.0.40
codegen_flags: <defaults>
</compile_context>

<pallas_src>
import jax
import jax.numpy as jnp
from jax.experimental import pallas as pl
from jax.experimental.pallas import tpu as pltpu


def _round_up(x, m):
    return ((x + m - 1) // m) * m


def _pick_batch_tile(B, block_b, align=8):
    """Largest batch tile <= block_b (multiple of `align`) with <=~10% padding waste."""
    t = min(block_b, _round_up(B, align))
    t -= t % align
    t = max(t, align)
    while t > align and (_round_up(B, t) - B) * 10 > B:   # >10% padded rows
        nt = max(align, (t // 2) - ((t // 2) % align))
        if nt == t:
            break
        t = nt
    return t


def firstnet_kernel(x_ref, w0_ref, b0_ref, w1_ref, b1_ref, w2_ref, b2_ref,
                    mask_ref, o_ref):
    """fc0->relu->fc1->relu->fc2->relu->log_softmax on one (TB, image_size) tile."""
    # In-kernel cast of the streamed tile (f32 HBM read, bf16 MXU operand).
    x = x_ref[...].astype(jnp.bfloat16)                         # (TB, 64)

    h0 = jnp.dot(x, w0_ref[...], preferred_element_type=jnp.float32)
    h0 = jnp.maximum(h0 + b0_ref[...], 0.0)                     # f32 (TB, 128)

    h1 = jnp.dot(h0.astype(jnp.bfloat16), w1_ref[...],
                 preferred_element_type=jnp.float32)
    h1 = jnp.maximum(h1 + b1_ref[...], 0.0)

    h2 = jnp.dot(h1.astype(jnp.bfloat16), w2_ref[...],
                 preferred_element_type=jnp.float32)
    h2 = jnp.maximum(h2 + b2_ref[...], 0.0)                     # (TB, NCLS_PAD)

    # Resident mask row: 0 for real classes, -inf for padded lane columns.
    h2 = h2 + mask_ref[...]

    # Numerically stable log_softmax over the lane-dense (128-wide) class axis.
    m = jnp.max(h2, axis=-1, keepdims=True)
    s = h2 - m
    lse = jnp.log(jnp.sum(jnp.exp(s), axis=-1, keepdims=True))
    o_ref[...] = (s - lse).astype(o_ref.dtype)


def firstnet_forward(x_nchw, params, image_size, *, block_b=1024,
                     out_dtype=jnp.float32, return_padded=False):
    """Flatten NCHW -> (B, image_size) and run the batch-tiled fused kernel.

    If return_padded=True the raw (Bpad, 128) buffer is returned so a downstream
    consumer (inside the same jit) can fuse the [:B, :n_classes] slice / gather
    instead of materializing a compact copy. Columns >= n_classes are -inf and
    rows >= B are padding.
    """
    w0, b0, w1, b1, w2, b2 = params
    x2d = x_nchw.reshape(-1, image_size)            # no K pad, no wrapper cast
    B = x2d.shape[0]
    k0 = image_size                                 # 64: equals full array dim -> legal block
    fc0 = w0.shape[1]
    fc1 = w1.shape[1]
    n_classes = w2.shape[1]

    LANE = 128
    nclp = _round_up(n_classes, LANE)               # lane-dense class axis (unmasked vst)

    # x tile sublane alignment: 8 for 4-byte inputs, 16 for bf16 inputs.
    align = 8 if x2d.dtype.itemsize >= 4 else 16
    tb = _pick_batch_tile(B, block_b, align)
    bp = _round_up(B, tb)
    if bp != B:
        x2d = jnp.pad(x2d, ((0, bp - B), (0, 0)))   # batch pad only when needed

    # Tiny one-time weight/bias prep (resident in VMEM across all grid steps).
    w0b = w0.astype(jnp.bfloat16)                              # (64, 128)
    w1b = w1.astype(jnp.bfloat16)                              # (128, 128)
    w2p = jnp.zeros((fc1, nclp), jnp.float32).at[:, :n_classes].set(w2)
    w2p = w2p.astype(jnp.bfloat16)                             # (128, 128)
    b2p = jnp.zeros((1, nclp), jnp.float32).at[:, :n_classes].set(b2)
    col = jnp.arange(nclp)[None, :]
    cls_mask = jnp.where(col < n_classes, 0.0, -jnp.inf).astype(jnp.float32)

    resident = lambda i: (0, 0)   # constant index_map: stays in VMEM across iterations

    out = pl.pallas_call(
        firstnet_kernel,
        out_shape=jax.ShapeDtypeStruct((bp, nclp), out_dtype),
        grid=(bp // tb,),
        in_specs=[
            pl.BlockSpec((tb, k0), lambda i: (i, 0)),    # x tile (streamed, unpadded K)
            pl.BlockSpec((k0, fc0), resident),           # w0 (bf16)
            pl.BlockSpec((1, fc0), resident),            # b0 (f32)
            pl.BlockSpec((fc0, fc1), resident),          # w1 (bf16)
            pl.BlockSpec((1, fc1), resident),            # b1 (f32)
            pl.BlockSpec((fc1, nclp), resident),         # w2 padded (bf16)
            pl.BlockSpec((1, nclp), resident),           # b2 padded (f32)
            pl.BlockSpec((1, nclp), resident),           # class mask row (f32)
        ],
        out_specs=pl.BlockSpec((tb, nclp), lambda i: (i, 0)),
        compiler_params=pltpu.CompilerParams(
            dimension_semantics=("parallel",)),
    )(x2d, w0b, b0, w1b, b1, w2p, b2p, cls_mask)

    if return_padded:
        return out
    return out[:B, :n_classes]


def init_params(key, image_size, fc0_size=128, fc1_size=128, fc2_size=10):
    """Deterministic init mimicking nn.Linear's U(-1/sqrt(fan_in), 1/sqrt(fan_in))."""
    ks = jax.random.split(key, 6)

    def linear(kw, kb, fan_in, fan_out):
        bound = 1.0 / jnp.sqrt(jnp.float32(fan_in))
        w = jax.random.uniform(kw, (fan_in, fan_out), jnp.float32, -bound, bound)
        b = jax.random.uniform(kb, (1, fan_out), jnp.float32, -bound, bound)
        return w, b

    w0, b0 = linear(ks[0], ks[1], image_size, fc0_size)
    w1, b1 = linear(ks[2], ks[3], fc0_size, fc1_size)
    w2, b2 = linear(ks[4], ks[5], fc1_size, fc2_size)
    return (w0, b0, w1, b1, w2, b2)


def reference_forward_f32(x_nchw, params, image_size):
    """Pure-f32 JAX reference of the PyTorch forward."""
    w0, b0, w1, b1, w2, b2 = params
    x = x_nchw.reshape(-1, image_size).astype(jnp.float32)
    x = jax.nn.relu(x @ w0 + b0)
    x = jax.nn.relu(x @ w1 + b1)
    x = jax.nn.relu(x @ w2 + b2)
    return jax.nn.log_softmax(x, axis=-1)


def reference_forward_bf16(x_nchw, params, image_size):
    """Reference with the same bf16-operand / f32-accumulate dtype policy as the kernel."""
    w0, b0, w1, b1, w2, b2 = params
    x = x_nchw.reshape(-1, image_size).astype(jnp.bfloat16)
    h = jnp.dot(x, w0.astype(jnp.bfloat16), preferred_element_type=jnp.float32)
    h = jnp.maximum(h + b0, 0.0)
    h = jnp.dot(h.astype(jnp.bfloat16), w1.astype(jnp.bfloat16),
                preferred_element_type=jnp.float32)
    h = jnp.maximum(h + b1, 0.0)
    h = jnp.dot(h.astype(jnp.bfloat16), w2.astype(jnp.bfloat16),
                preferred_element_type=jnp.float32)
    h = jnp.maximum(h + b2, 0.0)
    return jax.nn.log_softmax(h, axis=-1)


if __name__ == "__main__":
    # Small shapes consistent with the module: batch=2, 1 channel, 8x8 image.
    B, C, H, W = 2, 1, 8, 8
    image_size = C * H * W  # 64

    key = jax.random.PRNGKey(0)
    kx, kp = jax.random.split(key)
    x = jax.random.normal(kx, (B, C, H, W), dtype=jnp.float32)
    params = init_params(kp, image_size, fc0_size=128, fc1_size=128, fc2_size=10)

    out = firstnet_forward(x, params, image_size)
    out = jax.block_until_ready(out)
    assert out.shape == (B, 10)

    # Tight check against a reference using the same bf16/f32 dtype policy.
    ref_bf16 = reference_forward_bf16(x, params, image_size)
    assert jnp.allclose(out, ref_bf16, atol=1e-3, rtol=1e-3)

    # Loose sanity check against the pure-f32 reference (bf16 operand rounding).
    ref_f32 = reference_forward_f32(x, params, image_size)
    assert jnp.allclose(out, ref_f32, atol=2e-1, rtol=2e-1)

    print("KERNEL_OK")
</pallas_src>

<mosaic_0001>
module attributes {stable_mosaic.version = 11 : i64} {
  func.func @firstnet_kernel(%arg0: i32, %arg1: memref<8x64xf32, #tpu.memory_space<vmem>>, %arg2: memref<64x128xbf16, #tpu.memory_space<vmem>>, %arg3: memref<1x128xf32, #tpu.memory_space<vmem>>, %arg4: memref<128x128xbf16, #tpu.memory_space<vmem>>, %arg5: memref<1x128xf32, #tpu.memory_space<vmem>>, %arg6: memref<128x128xbf16, #tpu.memory_space<vmem>>, %arg7: memref<1x128xf32, #tpu.memory_space<vmem>>, %arg8: memref<1x128xf32, #tpu.memory_space<vmem>>, %arg9: memref<8x128xf32, #tpu.memory_space<vmem>>) attributes {dimension_semantics = [#tpu.dimension_semantics<parallel>], iteration_bounds = array<i64: 1>, scalar_prefetch = 0 : i64, scratch_operands = 0 : i64, tpu.core_type = #tpu.core_type<tc>, window_params = [{transform_indices = @transform_0, window_bounds = array<i64: 8, 64>}, {pipeline_mode = #tpu.pipeline_mode<synchronous>, transform_indices = @transform_1, window_bounds = array<i64: 64, 128>}, {pipeline_mode = #tpu.pipeline_mode<synchronous>, transform_indices = @transform_2, window_bounds = array<i64: 1, 128>}, {pipeline_mode = #tpu.pipeline_mode<synchronous>, transform_indices = @transform_3, window_bounds = array<i64: 128, 128>}, {pipeline_mode = #tpu.pipeline_mode<synchronous>, transform_indices = @transform_4, window_bounds = array<i64: 1, 128>}, {pipeline_mode = #tpu.pipeline_mode<synchronous>, transform_indices = @transform_5, window_bounds = array<i64: 128, 128>}, {pipeline_mode = #tpu.pipeline_mode<synchronous>, transform_indices = @transform_6, window_bounds = array<i64: 1, 128>}, {pipeline_mode = #tpu.pipeline_mode<synchronous>, transform_indices = @transform_7, window_bounds = array<i64: 1, 128>}, {transform_indices = @transform_8, window_bounds = array<i64: 8, 128>}]} {
    %c0 = arith.constant 0 : index
    %c0_0 = arith.constant 0 : index
    %0 = vector.load %arg1[%c0, %c0_0] : memref<8x64xf32, #tpu.memory_space<vmem>>, vector<8x64xf32>
    %1 = arith.truncf %0 : vector<8x64xf32> to vector<8x64xbf16>
    %c0_1 = arith.constant 0 : index
    %c0_2 = arith.constant 0 : index
    %2 = vector.load %arg2[%c0_1, %c0_2] : memref<64x128xbf16, #tpu.memory_space<vmem>>, vector<64x128xbf16>
    %cst = arith.constant dense<0.000000e+00> : vector<8x128xf32>
    %3 = tpu.matmul %1, %2, %cst {dimension_numbers = #tpu.dot_dimension_numbers<[1], [0], [0], [1], [0, 0, 1, 1], [], []>} : vector<8x64xbf16>, vector<64x128xbf16>, vector<8x128xf32> -> vector<8x128xf32>
    %c0_3 = arith.constant 0 : index
    %c0_4 = arith.constant 0 : index
    %4 = vector.load %arg3[%c0_3, %c0_4] : memref<1x128xf32, #tpu.memory_space<vmem>>, vector<1x128xf32>
    %5 = vector.broadcast %4 : vector<1x128xf32> to vector<8x128xf32>
    %6 = arith.addf %3, %5 : vector<8x128xf32>
    %cst_5 = arith.constant 0.000000e+00 : f32
    %7 = vector.broadcast %cst_5 : f32 to vector<8x128xf32>
    %8 = arith.maximumf %6, %7 : vector<8x128xf32>
    %9 = arith.truncf %8 : vector<8x128xf32> to vector<8x128xbf16>
    %c0_6 = arith.constant 0 : index
    %c0_7 = arith.constant 0 : index
    %10 = vector.load %arg4[%c0_6, %c0_7] : memref<128x128xbf16, #tpu.memory_space<vmem>>, vector<128x128xbf16>
    %cst_8 = arith.constant dense<0.000000e+00> : vector<8x128xf32>
    %11 = tpu.matmul %9, %10, %cst_8 {dimension_numbers = #tpu.dot_dimension_numbers<[1], [0], [0], [1], [0, 0, 1, 1], [], []>} : vector<8x128xbf16>, vector<128x128xbf16>, vector<8x128xf32> -> vector<8x128xf32>
    %c0_9 = arith.constant 0 : index
    %c0_10 = arith.constant 0 : index
    %12 = vector.load %arg5[%c0_9, %c0_10] : memref<1x128xf32, #tpu.memory_space<vmem>>, vector<1x128xf32>
    %13 = vector.broadcast %12 : vector<1x128xf32> to vector<8x128xf32>
    %14 = arith.addf %11, %13 : vector<8x128xf32>
    %cst_11 = arith.constant 0.000000e+00 : f32
    %15 = vector.broadcast %cst_11 : f32 to vector<8x128xf32>
    %16 = arith.maximumf %14, %15 : vector<8x128xf32>
    %17 = arith.truncf %16 : vector<8x128xf32> to vector<8x128xbf16>
    %c0_12 = arith.constant 0 : index
    %c0_13 = arith.constant 0 : index
    %18 = vector.load %arg6[%c0_12, %c0_13] : memref<128x128xbf16, #tpu.memory_space<vmem>>, vector<128x128xbf16>
    %cst_14 = arith.constant dense<0.000000e+00> : vector<8x128xf32>
    %19 = tpu.matmul %17, %18, %cst_14 {dimension_numbers = #tpu.dot_dimension_numbers<[1], [0], [0], [1], [0, 0, 1, 1], [], []>} : vector<8x128xbf16>, vector<128x128xbf16>, vector<8x128xf32> -> vector<8x128xf32>
    %c0_15 = arith.constant 0 : index
    %c0_16 = arith.constant 0 : index
    %20 = vector.load %arg7[%c0_15, %c0_16] : memref<1x128xf32, #tpu.memory_space<vmem>>, vector<1x128xf32>
    %21 = vector.broadcast %20 : vector<1x128xf32> to vector<8x128xf32>
    %22 = arith.addf %19, %21 : vector<8x128xf32>
    %cst_17 = arith.constant 0.000000e+00 : f32
    %23 = vector.broadcast %cst_17 : f32 to vector<8x128xf32>
    %24 = arith.maximumf %22, %23 : vector<8x128xf32>
    %c0_18 = arith.constant 0 : index
    %c0_19 = arith.constant 0 : index
    %25 = vector.load %arg8[%c0_18, %c0_19] : memref<1x128xf32, #tpu.memory_space<vmem>>, vector<1x128xf32>
    %26 = vector.broadcast %25 : vector<1x128xf32> to vector<8x128xf32>
    %27 = arith.addf %24, %26 : vector<8x128xf32>
    %cst_20 = arith.constant dense<0xFF800000> : vector<8xf32>
    %28 = vector.multi_reduction <maximumf>, %27, %cst_20 [1] : vector<8x128xf32> to vector<8xf32>
    %29 = vector.shape_cast %28 : vector<8xf32> to vector<8x1xf32>
    %30 = vector.broadcast %29 : vector<8x1xf32> to vector<8x128xf32>
    %31 = arith.subf %27, %30 : vector<8x128xf32>
    %32 = math.exp %31 : vector<8x128xf32>
    %cst_21 = arith.constant dense<0.000000e+00> : vector<8xf32>
    %33 = vector.multi_reduction <add>, %32, %cst_21 [1] : vector<8x128xf32> to vector<8xf32>
    %34 = vector.shape_cast %33 : vector<8xf32> to vector<8x1xf32>
    %35 = math.log %34 : vector<8x1xf32>
    %36 = vector.broadcast %35 : vector<8x1xf32> to vector<8x128xf32>
    %37 = arith.subf %31, %36 : vector<8x128xf32>
    %c0_22 = arith.constant 0 : index
    %c0_23 = arith.constant 0 : index
    %38 = vector.load %arg9[%c0_22, %c0_23] : memref<8x128xf32, #tpu.memory_space<vmem>>, vector<8x128xf32>
    tpu.vector_store %arg9[%c0_22, %c0_23], %37 {strides = array<i32>} : memref<8x128xf32, #tpu.memory_space<vmem>>, vector<8x128xf32>,
    return
  }
  func.func @transform_0(%arg0: i32) -> (i32, i32) {
    %c0_i32 = arith.constant 0 : i32
    %c0_i32_0 = arith.constant 0 : i32
    return %arg0, %c0_i32 : i32, i32
  }
  func.func @transform_1(%arg0: i32) -> (i32, i32) {
    %c0_i32 = arith.constant 0 : i32
    %c0_i32_0 = arith.constant 0 : i32
    %c0_i32_1 = arith.constant 0 : i32
    return %c0_i32, %c0_i32_0 : i32, i32
  }
  func.func @transform_2(%arg0: i32) -> (i32, i32) {
    %c0_i32 = arith.constant 0 : i32
    %c0_i32_0 = arith.constant 0 : i32
    %c0_i32_1 = arith.constant 0 : i32
    return %c0_i32, %c0_i32_0 : i32, i32
  }
  func.func @transform_3(%arg0: i32) -> (i32, i32) {
    %c0_i32 = arith.constant 0 : i32
    %c0_i32_0 = arith.constant 0 : i32
    %c0_i32_1 = arith.constant 0 : i32
    return %c0_i32, %c0_i32_0 : i32, i32
  }
  func.func @transform_4(%arg0: i32) -> (i32, i32) {
    %c0_i32 = arith.constant 0 : i32
    %c0_i32_0 = arith.constant 0 : i32
    %c0_i32_1 = arith.constant 0 : i32
    return %c0_i32, %c0_i32_0 : i32, i32
  }
  func.func @transform_5(%arg0: i32) -> (i32, i32) {
    %c0_i32 = arith.constant 0 : i32
    %c0_i32_0 = arith.constant 0 : i32
    %c0_i32_1 = arith.constant 0 : i32
    return %c0_i32, %c0_i32_0 : i32, i32
  }
  func.func @transform_6(%arg0: i32) -> (i32, i32) {
    %c0_i32 = arith.constant 0 : i32
    %c0_i32_0 = arith.constant 0 : i32
    %c0_i32_1 = arith.constant 0 : i32
    return %c0_i32, %c0_i32_0 : i32, i32
  }
  func.func @transform_7(%arg0: i32) -> (i32, i32) {
    %c0_i32 = arith.constant 0 : i32
    %c0_i32_0 = arith.constant 0 : i32
    %c0_i32_1 = arith.constant 0 : i32
    return %c0_i32, %c0_i32_0 : i32, i32
  }
  func.func @transform_8(%arg0: i32) -> (i32, i32) {
    %c0_i32 = arith.constant 0 : i32
    %c0_i32_0 = arith.constant 0 : i32
    return %arg0, %c0_i32 : i32, i32
  }
}

</mosaic_0001>

<bundles_post_ra>
// kernel: tpu_custom_call.1
= control target key start
LH: loop header
LB: loop body
LE: loop exit
PB: predicated region body
PF: predicated region fallthrough
CT: control target
= control target key end

     0   :  { %13 = vsyncpa [#allocation3], 0  ;;  %s789_s0 = inlined_call_operand.hbm [shape: f32[8,64], index: 0, kind: input, shape index: {}]   ;;  %s790_s1 = inlined_call_operand.hbm [shape: bf16[64,128], index: 1, kind: input, shape index: {}]   ;;  %s791_s2 = inlined_call_operand.vmem [shape: f32[1,128], index: 2, kind: input, shape index: {}]   ;;  %s792_s3 = inlined_call_operand.hbm [shape: bf16[128,128], index: 3, kind: input, shape index: {}]   ;;  %s793_s4 = inlined_call_operand.vmem [shape: f32[1,128], index: 4, kind: input, shape index: {}]   ;;  %s794_s5 = inlined_call_operand.hbm [shape: bf16[128,128], index: 5, kind: input, shape index: {}]   ;;  %s795_s6 = inlined_call_operand.vmem [shape: f32[1,128], index: 6, kind: input, shape index: {}]   ;;  %s796_s7 = inlined_call_operand.vmem [shape: f32[1,128], index: 7, kind: input, shape index: {}]   ;;  %s797_s8 = inlined_call_operand.hbm [shape: f32[8,128], index: 8, kind: output, shape index: {}]  }
   0x1   :  { %14 = vsyncpa [#allocation6], 0 }
   0x2   :  { %15 = vsyncpa [#allocation9], 0 }
   0x3   :  { %16 = vsyncpa [#allocation4], 0  ;;  %s673_s27 = smov [#allocation5]  }
   0x4   :  { %s32_s28 = sshll.u32 %s673_s27, 4  ;;  %s33_s28 = int_to_ptr.vmem [resolvable:$true] %s32_s28 }
   0x5   :  { %s573_s29 = scalar_lea.vmem %s33_s28, 512  ;;  %p578_p1 = scmp.lt.s32.totalorder %s33_s28, %s33_s28 }
   0x6   :  { %p574_p0 = scmp.ne.s32.totalorder %s33_s28, %s573_s29  ;;  %p579_p2 = scmp.lt.s32.totalorder %s573_s29, %s573_s29 }
   0x8   :  { %p580_p3 = por %p579_p2, %p578_p1 }
   0xa   :  { %p581_p4 = pnand %p580_p3, %p574_p0 }
   0xc   :  { %584 = shalt.err (!%p581_p4)
}
   0xd   :  { %s674_s30 = smov 64   ;;  %s675_s9 = smov 4  }
   0xe   :  { %38 = dma.hbm_to_vmem [thread:$0]  %s790_s1, 512, %s33_s28, [#allocation6], %s674_s30, %s674_s30, %s675_s9  }
   0xf   :  { %s676_s12 = smov [#allocation2]   ;;  %s677_s14 = smov [#allocation7]  }
  0x10   :  { %s23_s13 = sshll.u32 %s676_s12, 4  ;;  %s46_s15 = sshll.u32 %s677_s14, 4  ;;  %s24_s13 = int_to_ptr.vmem [resolvable:$true] %s23_s13  ;;  %s47_s15 = int_to_ptr.vmem [resolvable:$true] %s46_s15 }
  0x11   :  { %s593_s16 = scalar_lea.vmem %s24_s13, 128  ;;  %p598_p6 = scmp.lt.s32.totalorder %s24_s13, %s24_s13 }
  0x12   :  { %p594_p5 = scmp.ne.s32.totalorder %s24_s13, %s593_s16  ;;  %p599_p7 = scmp.lt.s32.totalorder %s593_s16, %s593_s16 }
  0x14   :  { %p600_p8 = por %p599_p7, %p598_p6 }
  0x16   :  { %p601_p9 = pnand %p600_p8, %p594_p5 }
  0x18   :  { %604 = shalt.err (!%p601_p9)
}
  0x19   :  { %26 = dma.hbm_to_vmem [thread:$0]  %s789_s0, 128, %s24_s13, [#allocation3]  }
  0x1a   :  { %s613_s19 = scalar_lea.vmem %s47_s15, 1024  ;;  %p618_p11 = scmp.lt.s32.totalorder %s47_s15, %s47_s15 }
  0x1b   :  { %p614_p10 = scmp.ne.s32.totalorder %s47_s15, %s613_s19  ;;  %p619_p12 = scmp.lt.s32.totalorder %s613_s19, %s613_s19 }
  0x1d   :  { %p620_p13 = por %p619_p12, %p618_p11 }
  0x1f   :  { %p621_p0 = pnand %p620_p13, %p614_p10 }
  0x21   :  { %624 = shalt.err (!%p621_p0)
}
  0x22   :  { %52 = dma.hbm_to_vmem [thread:$0]  %s792_s3, 1024, %s47_s15, [#allocation6], %s674_s30, %s674_s30, %s675_s9  }
  0x23   :  { %s678_s21 = smov [#allocation8]  }
  0x24   :  { %s60_s22 = sshll.u32 %s678_s21, 4  ;;  %s61_s22 = int_to_ptr.vmem [resolvable:$true] %s60_s22 }
  0x25   :  { %s633_s23 = scalar_lea.vmem %s61_s22, 1024  ;;  %p638_p2 = scmp.lt.s32.totalorder %s61_s22, %s61_s22 }
  0x26   :  { %p634_p1 = scmp.ne.s32.totalorder %s61_s22, %s633_s23  ;;  %p639_p3 = scmp.lt.s32.totalorder %s633_s23, %s633_s23 }
  0x28   :  { %p640_p4 = por %p639_p3, %p638_p2 }
  0x2a   :  { %p641_p5 = pnand %p640_p4, %p634_p1 }
  0x2c   :  { %644 = shalt.err (!%p641_p5)
}
  0x2d   :  { %66 = dma.hbm_to_vmem [thread:$0]  %s794_s5, 1024, %s61_s22, [#allocation9], %s674_s30, %s674_s30, %s675_s9  }
  0x2e   :  { %665 = dma.done.wait [#allocation3], 128  }
  0x2f   :  { %666 = vsyncadd [#allocation3], 4294967168 }
  0x30   :  { %667 = dma.done.wait [#allocation6], 1536  }
  0x31   :  { %668 = vsyncadd [#allocation6], 4294965760 }
  0x32   :  { %669 = dma.done.wait [#allocation9], 1024  }
  0x33   :  { %670 = vsyncadd [#allocation9], 4294966272  ;;  %v679_v0 = vmov 0.0   ;;  %vm680_vm0 = vmmov 0   ;;  %v541_v1 = vld [vmem:[#allocation5 + $0x18] sm:$0xff]   ;;  %v542_v2 = vld [vmem:[#allocation5 + $0x10] sm:$0xff]  }
  0x34   :  { %480 = vmatprep.subr.bf16.mxu0 %v679_v0  ;;  %488 = vmatprep.mubr.msk.bf16.mxu0 %vm680_vm0, %v679_v0  ;;  %v545_v3 = vld [vmem:[#allocation7 + $0x38] sm:$0xff]   ;;  %v543_v4 = vld [vmem:[#allocation5 + $0x8] sm:$0xff]   ;;  %v546_v5 = vld [vmem:[#allocation7 + $0x30] sm:$0xff]   ;;  %vm125_vm1 = vcmask 523264  }
  0x35   :  { %492 = vmatprep.subr.bf16.mxu1 %v679_v0  ;;  %508 = vmatprep.mubr.msk.bf16.mxu1 %vm680_vm0, %v679_v0  ;;  %v544_v6 = vld [vmem:[#allocation5] sm:$0xff]   ;;  %v84_v7 = vld [vmem:[#allocation2] sm:$0xff]  ;;  %v547_v8 = vld [vmem:[#allocation7 + $0x28] sm:$0xff]  }
  0x36   :  { %481 = vmatpush3.bf16.msra.mxu0 %v541_v1  ;;  %493 = vmatpush3.bf16.msra.mxu1 %v545_v3  ;;  %v85_v9 = vpack.c.bf16 %v84_v7, %v84_v7  ;;  %v548_v10 = vld [vmem:[#allocation7 + $0x20] sm:$0xff]   ;;  %v549_v11 = vld [vmem:[#allocation7 + $0x18] sm:$0xff]   ;;  %v550_v12 = vld [vmem:[#allocation7 + $0x10] sm:$0xff]  }
  0x37   :  { %482 = vmatprep.subr.bf16.mxu0 %v679_v0  ;;  %494 = vmatprep.subr.bf16.mxu1 %v679_v0  ;;  %v551_v13 = vld [vmem:[#allocation7 + $0x8] sm:$0xff]   ;;  %v552_v14 = vld [vmem:[#allocation7] sm:$0xff]   ;;  %v553_v15 = vld [vmem:[#allocation8 + $0x38] sm:$0xff]  }
  0x38   :  { %v554_v16 = vld [vmem:[#allocation8 + $0x30] sm:$0xff]   ;;  %v555_v17 = vld [vmem:[#allocation8 + $0x28] sm:$0xff]   ;;  %v556_v18 = vld [vmem:[#allocation8 + $0x20] sm:$0xff]  }
  0x39   :  { %v557_v19 = vld [vmem:[#allocation8 + $0x18] sm:$0xff]   ;;  %v558_v20 = vld [vmem:[#allocation8 + $0x10] sm:$0xff]   ;;  %v559_v29 = vld [vmem:[#allocation8 + $0x8] sm:$0xff]  }
  0x3a   :  { %483 = vmatpush3.bf16.msra.mxu0 %v542_v2  ;;  %495 = vmatpush3.bf16.msra.mxu1 %v546_v5  ;;  %v432_v21 = vld [vmem:[%s791_s2] ss:$0 sm:$0xff]  ;;  %v560_v30 = vld [vmem:[#allocation8] sm:$0xff]  }
  0x3b   :  { %484 = vmatprep.subr.bf16.mxu0 %v679_v0  ;;  %496 = vmatprep.subr.bf16.mxu1 %v679_v0  ;;  %v438_v31 = vld [vmem:[%s793_s4] ss:$0 sm:$0xff]  ;;  %s681_s4 = smov [#allocation10]  }
  0x3c   :  { %v447_v39 = vld [vmem:[%s795_s6] ss:$0 sm:$0xff]  ;;  %s421_s6 = sshll.u32 %s681_s4, 4  ;;  %s422_s6 = int_to_ptr.vmem [resolvable:$true] %s421_s6 }
  0x3d   :  { %v456_v43 = vld [vmem:[%s796_s7] ss:$0 sm:$0xff]  ;;  %s645_s7 = scalar_lea.vmem %s422_s6, 128  ;;  %p650_p7 = scmp.lt.s32.totalorder %s422_s6, %s422_s6 }
  0x3e   :  { %485 = vmatpush3.bf16.msra.mxu0 %v543_v4  ;;  %497 = vmatpush3.bf16.msra.mxu1 %v547_v8  ;;  %p646_p6 = scmp.ne.s32.totalorder %s422_s6, %s645_s7  ;;  %p651_p8 = scmp.lt.s32.totalorder %s645_s7, %s645_s7 }
  0x3f   :  { %486 = vmatprep.subr.bf16.mxu0 %v679_v0  ;;  %498 = vmatprep.subr.bf16.mxu1 %v679_v0 }
  0x40   :  { %p652_p9 = por %p651_p8, %p650_p7 }
  0x42   :  { %487 = vmatpush3.bf16.msra.mxu0 %v544_v6  ;;  %499 = vmatpush3.bf16.msra.mxu1 %v548_v10  ;;  %p653_p10 = pnand %p652_p9, %p646_p6 }
  0x43   :  { %512 = vmatprep.subr.bf16.mxu0 %v679_v0  ;;  %500 = vmatprep.subr.bf16.mxu1 %v679_v0 }
  0x45   :  { %489 = vmatmul.mubr.msk.bf16.vlgmr.msra.gmra.mxu0 %vm125_vm1, %v85_v9 }
  0x46   :  { %528 = vmatprep.mubr.msk.bf16.mxu0 %vm680_vm0, %v679_v0  ;;  %501 = vmatpush3.bf16.msra.mxu1 %v549_v11 }
  0x47   :  { %502 = vmatprep.subr.bf16.mxu1 %v679_v0  ;;  %513 = vmatpush3.bf16.msra.mxu0 %v553_v15 }
  0x48   :  { %514 = vmatprep.subr.bf16.mxu0 %v679_v0 }
  0x4a   :  { %503 = vmatpush3.bf16.msra.mxu1 %v550_v12 }
  0x4b   :  { %504 = vmatprep.subr.bf16.mxu1 %v679_v0  ;;  %515 = vmatpush3.bf16.msra.mxu0 %v554_v16 }
  0x4c   :  { %516 = vmatprep.subr.bf16.mxu0 %v679_v0 }
  0x4e   :  { %505 = vmatpush3.bf16.msra.mxu1 %v551_v13 }
  0x4f   :  { %506 = vmatprep.subr.bf16.mxu1 %v679_v0  ;;  %517 = vmatpush3.bf16.msra.mxu0 %v555_v17 }
  0x50   :  { %518 = vmatprep.subr.bf16.mxu0 %v679_v0 }
  0x52   :  { %507 = vmatpush3.bf16.msra.mxu1 %v552_v14 }
  0x53   :  { %519 = vmatpush3.bf16.msra.mxu0 %v556_v18 }
  0x54   :  { %520 = vmatprep.subr.bf16.mxu0 %v679_v0 }
  0x57   :  { %521 = vmatpush3.bf16.msra.mxu0 %v557_v19 }
  0x58   :  { %522 = vmatprep.subr.bf16.mxu0 %v679_v0 }
  0x5b   :  { %523 = vmatpush3.bf16.msra.mxu0 %v558_v20 }
  0x5c   :  { %524 = vmatprep.subr.bf16.mxu0 %v679_v0 }
  0x5f   :  { %525 = vmatpush3.bf16.msra.mxu0 %v559_v29 }
  0x60   :  { %526 = vmatprep.subr.bf16.mxu0 %v679_v0 }
  0x63   :  { %527 = vmatpush3.bf16.msra.mxu0 %v560_v30 }
 0x105   :  { %v163_v22 = vpop.f32.mrf.mxu0 }
 0x106   :  { %v164_v23 = vadd.f32 %v432_v21, %v163_v22 }
 0x107   :  { %v490_v24 = vpop.f32.mrf.mxu0 }
 0x108   :  { %v169_v25 = vmax.f32 %v164_v23, 0.0 }
 0x109   :  { %v166_v26 = vpop.f32.mrf.mxu0 }
 0x10a   :  { %v170_v27 = vpack.c.bf16 %v169_v25, %v169_v25 }
 0x10b   :  { %v491_v28 = vpop.f32.mrf.mxu0 }
 0x10c   :  { %509 = vmatmul.mubr.bf16.vlgmr.msra.gmra.mxu1 %v170_v27 }
 0x1cc   :  { %v276_v32 = vpop.f32.mrf.mxu1 }
 0x1cd   :  { %v277_v33 = vadd.f32 %v438_v31, %v276_v32 }
 0x1ce   :  { %v510_v34 = vpop.f32.mrf.mxu1 }
 0x1cf   :  { %v282_v35 = vmax.f32 %v277_v33, 0.0 }
 0x1d0   :  { %v279_v36 = vpop.f32.mrf.mxu1 }
 0x1d1   :  { %v283_v37 = vpack.c.bf16 %v282_v35, %v282_v35 }
 0x1d2   :  { %v511_v38 = vpop.f32.mrf.mxu1 }
 0x1d3   :  { %529 = vmatmul.mubr.bf16.vlgmr.msra.gmra.mxu0 %v283_v37 }
 0x293   :  { %v389_v40 = vpop.f32.mrf.mxu0 }
 0x294   :  { %v390_v41 = vadd.f32 %v447_v39, %v389_v40 }
 0x295   :  { %v530_v42 = vpop.f32.mrf.mxu0 }
 0x296   :  { %v395_v44 = vmax.f32 %v390_v41, 0.0 }
 0x297   :  { %v392_v45 = vpop.f32.mrf.mxu0 }
 0x298   :  { %v403_v46 = vadd.f32 %v456_v43, %v395_v44 }
 0x299   :  { %v531_v47 = vpop.f32.mrf.mxu0 }
 0x29a   :  { %404 = vmax.xlane.f32.xlu0 %v403_v46 }
 0x323   :  { %v405_v48 = vpop.xlane.xlu0 %404 }
 0x324   :  { %v406_v49 = vsub.f32 %v403_v46, %v405_v48 }
 0x326   :  { %v407_v50 = vmul.f32 1.442695, %v406_v49 }
 0x328   :  { %561 = vpow2.f32 %v407_v50 }
 0x335   :  { %v562_v51 = vpop.eup %561 }
 0x336   :  { %409 = vadd.xlane.f32.xlu0 %v562_v51 }
 0x3bf   :  { %v410_v52 = vpop.xlane.xlu0 %409 }
 0x3c0   :  { %563 = vlog2.f32 %v410_v52 }
 0x3cd   :  { %v564_v53 = vpop.eup %563 }
 0x3ce   :  { %v412_v54 = vmul.f32 0.6931472, %v564_v53 }
 0x3d0   :  { %v413_v55 = vsub.f32 %v406_v49, %v412_v54 }
 0x3d2   :  { %414 = vst [vmem:[#allocation10] sm:$0xff] %v413_v55 }
 0x3d3   :  { %656 = shalt.err (!%p653_p10)
}
 0x3d4   :  { %424 = dma.vmem_to_hbm [thread:$0]  %s422_s6, 128, %s797_s8, [#allocation4]  }
 0x3d5   :  { %671 = dma.done.wait [#allocation4], 128  }
 0x3d6   :  { %672 = vsyncadd [#allocation4], 4294967168 }
 0x3d7   :  { %428 = vsyncpa [#allocation3], 1 }
 0x3d8   :  { %429 = vsyncpa [#allocation6], 1 }
 0x3d9   :  { %430 = vsyncpa [#allocation9], 1 }
 0x3da   :  { %431 = vsyncpa [#allocation4], 1 }

</bundles_post_ra>
